<compile_context>
chip_gen: v5e
topology: v5e:2x2
jax: 0.10.0
libtpu: 0.0.40
codegen_flags: <defaults>
</compile_context>

<pallas_src>
import jax
import jax.numpy as jnp
from jax.experimental import pallas as pl
from jax.experimental.pallas import tpu as pltpu

KSIZES = (1, 2, 3, 4)
KMAX = max(KSIZES)                                        # 4
PAD_BEFORE = {k: (k - 1) // 2 for k in KSIZES}            # {1:0, 2:0, 3:1, 4:1}
MAX_BEFORE = max(PAD_BEFORE.values())                     # 1
MAX_AFTER = max(k - 1 - PAD_BEFORE[k] for k in KSIZES)    # 2

# f32 MXU operands keep exact PyTorch-f32 forward semantics (passes the 1e-4
# check). On v6e/v7x, casting patches/w_comb to bf16 (keeping the f32
# preferred_element_type accumulate) is a one-line fast-path, but at these
# shapes the kernel is layout/DMA-bound, not MXU-bound, so f32 is kept.
MATMUL_DTYPE = jnp.float32


def convblock_kernel(p_ref, w_ref, b_ref, o_ref):
    """One batch element per grid step.

    p_ref : (1, K, HW)   im2col patches, lane axis = H*W
    w_ref : (Cout, K)    combined zero-padded weights (all 4 convs)
    b_ref : (Cout, 1)    concatenated biases
    o_ref : (1, Cout, HW) output in NC(HW) layout (lane-dense stores)
    """
    acc = jnp.dot(w_ref[...], p_ref[0], preferred_element_type=jnp.float32)
    o_ref[0] = (acc + b_ref[...]).astype(o_ref.dtype)


def conv_block(x_nchw, weights, biases):
    """weights[i]: torch-layout (d, Cin, k, k); biases[i]: (d,). Returns NCHW."""
    N, Cin, H, W = x_nchw.shape
    d = weights[0].shape[0]
    Cout = 4 * d
    HW = H * W
    K = KMAX * KMAX * Cin

    # ---- host/XLA-side prep (one-time, outside the hot loop) --------------
    x = x_nchw.astype(jnp.float32)
    xp = jnp.pad(x, ((0, 0), (0, 0),
                     (MAX_BEFORE, MAX_AFTER),
                     (MAX_BEFORE, MAX_AFTER)))

    # im2col over the unified 4x4 window; ordering along K is (tap, cin) with
    # tap = wh*KMAX + ww. Lane axis of the result is H*W.
    taps = []
    for wh in range(KMAX):
        for ww in range(KMAX):
            taps.append(xp[:, :, wh:wh + H, ww:ww + W].reshape(N, Cin, HW))
    patches = jnp.concatenate(taps, axis=1).astype(MATMUL_DTYPE)   # (N, K, HW)

    # Combined zero-padded weight: conv ci's tap (kh, kw) lands at window
    # position (off+kh, off+kw), off = MAX_BEFORE - pad_before_k.
    w_comb = jnp.zeros((Cout, K), jnp.float32)
    for ci, (k, w) in enumerate(zip(KSIZES, weights)):
        off = MAX_BEFORE - PAD_BEFORE[k]
        for kh in range(k):
            for kw in range(k):
                p = (off + kh) * KMAX + (off + kw)
                w_comb = w_comb.at[ci * d:(ci + 1) * d,
                                   p * Cin:(p + 1) * Cin].set(
                    w[:, :, kh, kw].astype(jnp.float32))
    w_comb = w_comb.astype(MATMUL_DTYPE)
    b_comb = jnp.concatenate(
        [b.astype(jnp.float32) for b in biases]).reshape(Cout, 1)

    # ---- fused kernel -----------------------------------------------------
    out = pl.pallas_call(
        convblock_kernel,
        out_shape=jax.ShapeDtypeStruct((N, Cout, HW), jnp.float32),
        grid=(N,),
        in_specs=[
            pl.BlockSpec((1, K, HW), lambda n: (n, 0, 0)),
            pl.BlockSpec((Cout, K), lambda n: (0, 0)),
            pl.BlockSpec((Cout, 1), lambda n: (0, 0)),
        ],
        out_specs=pl.BlockSpec((1, Cout, HW), lambda n: (n, 0, 0)),
        compiler_params=pltpu.CompilerParams(
            dimension_semantics=("parallel",)),   # batch across TCs on v7x
    )(patches, w_comb, b_comb)

    # Output is already channel-major; reshape (free) back to NCHW.
    return out.reshape(N, Cout, H, W)


def ref_conv_block(x_nchw, weights, biases):
    """Pure-JAX reference matching PyTorch padding='same' semantics."""
    outs = []
    for k, w, b in zip(KSIZES, weights, biases):
        pb = (k - 1) // 2
        pa = (k - 1) - pb
        o = jax.lax.conv_general_dilated(
            x_nchw.astype(jnp.float32), w.astype(jnp.float32),
            window_strides=(1, 1), padding=((pb, pa), (pb, pa)),
            dimension_numbers=("NCHW", "OIHW", "NCHW"))
        outs.append(o + b.reshape(1, -1, 1, 1))
    return jnp.concatenate(outs, axis=1)


if __name__ == "__main__":
    # Module config: input_dim=4, output_dim=16 -> d = 16 // 4 = 4 per branch.
    input_dim, output_dim = 4, 16
    d = output_dim // 4
    N, H, W = 2, 16, 16

    key = jax.random.PRNGKey(0)
    keys = jax.random.split(key, 1 + 2 * len(KSIZES))
    x = jax.random.normal(keys[0], (N, input_dim, H, W), dtype=jnp.float32)

    weights, biases = [], []
    for i, k in enumerate(KSIZES):
        fan_in = input_dim * k * k
        bound = 1.0 / (fan_in ** 0.5)   # matches nn.Conv2d default init range
        w = jax.random.uniform(keys[1 + 2 * i], (d, input_dim, k, k),
                               minval=-bound, maxval=bound, dtype=jnp.float32)
        b = jax.random.uniform(keys[2 + 2 * i], (d,),
                               minval=-bound, maxval=bound, dtype=jnp.float32)
        weights.append(w)
        biases.append(b)

    out = jax.block_until_ready(conv_block(x, weights, biases))
    ref = jax.block_until_ready(ref_conv_block(x, weights, biases))

    assert out.shape == (N, output_dim, H, W), out.shape
    assert jnp.allclose(out, ref, atol=1e-4, rtol=1e-4), float(
        jnp.max(jnp.abs(out - ref)))
    print("KERNEL_OK")
</pallas_src>

<mosaic_0001>
module attributes {stable_mosaic.version = 11 : i64} {
  func.func @convblock_kernel(%arg0: i32, %arg1: memref<1x64x256xf32, #tpu.memory_space<vmem>>, %arg2: memref<16x64xf32, #tpu.memory_space<vmem>>, %arg3: memref<16x1xf32, #tpu.memory_space<vmem>>, %arg4: memref<1x16x256xf32, #tpu.memory_space<vmem>>) attributes {dimension_semantics = [#tpu.dimension_semantics<parallel>], iteration_bounds = array<i64: 2>, scalar_prefetch = 0 : i64, scratch_operands = 0 : i64, tpu.core_type = #tpu.core_type<tc>, window_params = [{transform_indices = @transform_0, window_bounds = array<i64: 1, 64, 256>}, {pipeline_mode = #tpu.pipeline_mode<synchronous>, transform_indices = @transform_1, window_bounds = array<i64: 16, 64>}, {pipeline_mode = #tpu.pipeline_mode<synchronous>, transform_indices = @transform_2, window_bounds = array<i64: 16, 1>}, {transform_indices = @transform_3, window_bounds = array<i64: 1, 16, 256>}]} {
    %c0 = arith.constant 0 : index
    %c0_0 = arith.constant 0 : index
    %0 = vector.load %arg2[%c0, %c0_0] : memref<16x64xf32, #tpu.memory_space<vmem>>, vector<16x64xf32>
    %c0_1 = arith.constant 0 : index
    %c0_2 = arith.constant 0 : index
    %c0_3 = arith.constant 0 : index
    %1 = vector.load %arg1[%c0_1, %c0_2, %c0_3] : memref<1x64x256xf32, #tpu.memory_space<vmem>>, vector<1x64x256xf32>
    %2 = vector.shape_cast %1 : vector<1x64x256xf32> to vector<64x256xf32>
    %cst = arith.constant dense<0.000000e+00> : vector<16x256xf32>
    %3 = tpu.matmul %0, %2, %cst {dimension_numbers = #tpu.dot_dimension_numbers<[1], [0], [0], [1], [0, 0, 1, 1], [], []>} : vector<16x64xf32>, vector<64x256xf32>, vector<16x256xf32> -> vector<16x256xf32>
    %c0_4 = arith.constant 0 : index
    %c0_5 = arith.constant 0 : index
    %4 = vector.load %arg3[%c0_4, %c0_5] : memref<16x1xf32, #tpu.memory_space<vmem>>, vector<16x1xf32>
    %5 = vector.broadcast %4 : vector<16x1xf32> to vector<16x256xf32>
    %6 = arith.addf %3, %5 : vector<16x256xf32>
    %c0_6 = arith.constant 0 : index
    %c0_7 = arith.constant 0 : index
    %c0_8 = arith.constant 0 : index
    %7 = vector.load %arg4[%c0_6, %c0_7, %c0_8] : memref<1x16x256xf32, #tpu.memory_space<vmem>>, vector<1x16x256xf32>
    %8 = vector.shape_cast %7 : vector<1x16x256xf32> to vector<16x256xf32>
    %9 = vector.shape_cast %6 : vector<16x256xf32> to vector<1x16x256xf32>
    tpu.vector_store %arg4[%c0_6, %c0_7, %c0_8], %9 {strides = array<i32>} : memref<1x16x256xf32, #tpu.memory_space<vmem>>, vector<1x16x256xf32>,
    return
  }
  func.func @transform_0(%arg0: i32) -> (i32, i32, i32) {
    %c0_i32 = arith.constant 0 : i32
    %c0_i32_0 = arith.constant 0 : i32
    %c0_i32_1 = arith.constant 0 : i32
    return %arg0, %c0_i32, %c0_i32_0 : i32, i32, i32
  }
  func.func @transform_1(%arg0: i32) -> (i32, i32) {
    %c0_i32 = arith.constant 0 : i32
    %c0_i32_0 = arith.constant 0 : i32
    %c0_i32_1 = arith.constant 0 : i32
    return %c0_i32, %c0_i32_0 : i32, i32
  }
  func.func @transform_2(%arg0: i32) -> (i32, i32) {
    %c0_i32 = arith.constant 0 : i32
    %c0_i32_0 = arith.constant 0 : i32
    %c0_i32_1 = arith.constant 0 : i32
    return %c0_i32, %c0_i32_0 : i32, i32
  }
  func.func @transform_3(%arg0: i32) -> (i32, i32, i32) {
    %c0_i32 = arith.constant 0 : i32
    %c0_i32_0 = arith.constant 0 : i32
    %c0_i32_1 = arith.constant 0 : i32
    return %arg0, %c0_i32, %c0_i32_0 : i32, i32, i32
  }
}

</mosaic_0001>

<bundles_post_ra>
// kernel: tpu_custom_call.1
= control target key start
LH: loop header
LB: loop body
LE: loop exit
PB: predicated region body
PF: predicated region fallthrough
CT: control target
= control target key end

     0   :  { %8 = vsyncpa [#allocation3], 0  ;;  %s736_s0 = inlined_call_operand.hbm [shape: f32[2,64,256], index: 0, kind: input, shape index: {}]   ;;  %s737_s1 = inlined_call_operand.vmem [shape: f32[16,64], index: 1, kind: input, shape index: {}]   ;;  %s738_s2 = inlined_call_operand.vmem [shape: f32[16,1], index: 2, kind: input, shape index: {}]   ;;  %s739_s3 = inlined_call_operand.hbm [shape: f32[2,16,256], index: 3, kind: output, shape index: {}]  }
   0x1   :  { %10 = vsyncpa [#allocation3 + $0x1], 0 }
   0x2   :  { %11 = vsyncpa [#allocation4], 0 }
   0x3   :  { %13 = vsyncpa [#allocation4 + $0x1], 0  ;;  %s578_s12 = smov 0   ;;  %s580_s13 = smov 0  }
   0x4   :  { %s582_s14 = smov 0   ;;  %s584_s15 = smov 0  }
   0x5 LB: > { %s599_s16 = sadd.s32 4294967295, %s551_s15   ;;  %s367_s17 = sadd.s32 4294967294, %s551_s15   ;;  %s551_s15 = sphi %s584_s15, %s749_s15   ;;  %s547_s14 = sphi %s582_s14, %s748_s14   ;;  %s543_s13 = sphi %s580_s13, %s747_s13   ;;  %s539_s12 = sphi %s578_s12, %s746_s12  }
   0x6   : > { %s603_s18 = sadd.s32 1, %s551_s15   ;;  %s26_s19 = sadd.s32 1, %s547_s14 }
   0x7   : > { %s23_s20 = ssub.s32 %s551_s15, %s603_s18  ;;  %p33_p0 = scmp.ne.s32.totalorder %s547_s14, %s543_s13 }
   0x8   : > { %p24_p1 = scmp.eq.s32.totalorder %s23_s20, 0  ;;  %p34_p2 = scmp.eq.s32.totalorder %s551_s15, 0 }
   0x9   : > { %p39_p3 = scmp.ne.s32.totalorder %s543_s13, %s539_s12  ;;  %p40_p4 = scmp.eq.s32.totalorder %s599_s16, 0 }
   0xa   : > { %s615_s21 = scalar_select %p24_p1, %s547_s14, %s26_s19  }
   0xb   : > { %p617_p5 = por %p34_p2, %p33_p0  ;;  %p621_p6 = por %p40_p4, %p39_p3 }
   0xc   : > { %p105_p7 = scmp.eq.s32.totalorder %s599_s16, 1  ;;  %p111_p8 = scmp.eq.s32.totalorder %s367_s17, 1 }
   0xd   : > { %p415_p10 = scmp.lt.s32.totalorder %s551_s15, 2  ;;  %s137_s26 = sand.u32 1, %s547_s14  }
   0xe   : > { %p628_p11 = por %p105_p7, %p33_p0  ;;  %p632_p12 = por %p111_p8, %p39_p3 }
   0xf   : > { %s385_s27 = sshll.u32 %s551_s15, 7  ;;  %s370_s28 = sshll.u32 %s137_s26, 7 }
  0x10   : > { %s146_s4 = scalar_lea.hbm %s736_s0, %s385_s27  ;;  %s141_s6 = scalar_lea.vmem [#allocation2], %s370_s28 }
  0x11   : > { %s147_s5 = sshll.u32 %s146_s4, 4  ;;  %s149_s7 = sshll.u32 %s141_s6, 4  ;;  %s148_s5 = int_to_ptr.hbm [resolvable:$true] %s147_s5  ;;  %s150_s7 = int_to_ptr.vmem [resolvable:$true] %s149_s7 }
  0x12   : > { %p643_p13 = pnand %p415_p10, %p617_p5  ;;  %p373_p0 = scmp.ge.s32.totalorder %s551_s15, 1 }
  0x13   : > { %p157_p1 = scmp.lt.s32.totalorder %s551_s15, 3  ;;  %s138_s9 = scalar_lea.sflag [#allocation3], %s137_s26 }
  0x14   : > { %s455_s10 = sshra.s32 %s148_s5, 4  ;;  %p459_p3 = pneg %p643_p13  ;;  %s456_s10 = int_to_ptr.hbm [resolvable:$true] %s455_s10 }
  0x15   : > { %s457_s11 = scalar_lea.hbm %s456_s10, 128  ;;  %s462_s20 = scalar_lea.hbm %s736_s0, 256 }
  0x16   : > { %p458_p2 = scmp.ne.s32.totalorder %s456_s10, %s457_s11  ;;  %p463_p5 = scmp.lt.s32.totalorder %s456_s10, %s736_s0 }
  0x17   : > { %p464_p8 = scmp.lt.s32.totalorder %s462_s20, %s457_s11 }
  0x18   : > { %p460_p4 = pnand %p459_p3, %p458_p2 }
  0x19   : > { %p465_p10 = por %p464_p8, %p463_p5 }
  0x1a   : > { %p461_p7 = pneg %p460_p4 }
  0x1c   : > { %p466_p9 = pnand %p465_p10, %p461_p7 }
  0x1e   : > { %469 = shalt.err (!%p466_p9)
}
  0x1f   : > { %s553_s26 = smov 256   ;;  %s554_s28 = smov 16  }
  0x20   : > { %410 = dma.hbm_to_vmem [thread:$0]  (!%p643_p13), %s148_s5, 2048, %s150_s7, %s138_s9, %s553_s26, %s553_s26, %s554_s28  }
  0x21   : > { %p158_p2 = pnand %p373_p0, %p157_p1 }
  0x22   : > { %s664_s29 = sand.u32 (!%p158_p2), 1, %s543_s13  }
  0x23   : > { %161 = sbr.rel (%p158_p2) target bundleno = 198 (0xc6), region = 32  ;;  %s374_s30 = sshll.u32 (!%p158_p2), %s664_s29, 7 }
  0x24   : > { %s164_s4 = scalar_lea.sflag (!%p158_p2), [#allocation3], %s664_s29  ;;  %s668_s6 = scalar_lea.vmem (!%p158_p2), [#allocation2], %s374_s30 }
  0x28   : > { %530 = dma.done.wait (%p621_p6), %s164_s4, 2048  }
  0x29   : > { %532 = vsyncadd (%p621_p6), %s164_s4, 4294965248  ;;  %v555_v0 = vmov 0   ;;  %v207_v1 = vld [vmem:[%s668_s6 + $0x70] sm:$0xff]  ;;  %v208_v2 = vld [vmem:[%s668_s6 + $0x78] sm:$0xff]  ;;  %vm221_vm0 = vcmask 523264   ;;  %s375_s19 = sshll.u32 %s664_s29, 5 }
  0x2a   : > { %454 = vset.pattern.permute.xlu0 %v555_v0  ;;  %v205_v3 = vld [vmem:[%s668_s6 + $0x60] sm:$0xff]  ;;  %236 = vmatpush.msra.mxu0 %v207_v1  ;;  %v206_v4 = vld [vmem:[%s668_s6 + $0x68] sm:$0xff]  ;;  %v203_v5 = vld [vmem:[%s668_s6 + $0x50] sm:$0xff]  ;;  %s386_s20 = sshll.u32 %s599_s16, 5  ;;  %s190_s28 = scalar_lea.vmem [#allocation5], %s375_s19 }
  0x2b   : > { %387 = vmatpush.msra.mxu2 %v207_v1  ;;  %259 = vmatpush.msra.mxu1 %v208_v2  ;;  %v204_v6 = vld [vmem:[%s668_s6 + $0x58] sm:$0xff]  ;;  %v201_v7 = vld [vmem:[%s668_s6 + $0x40] sm:$0xff]  ;;  %v202_v8 = vld [vmem:[%s668_s6 + $0x48] sm:$0xff]  ;;  %s290_s26 = scalar_lea.hbm %s739_s3, %s386_s20  ;;  %s291_s30 = sshll.u32 %s190_s28, 4  ;;  %s292_s30 = int_to_ptr.vmem [resolvable:$true] %s291_s30 }
  0x2c   : > { %395 = vmatpush.msra.mxu3 %v208_v2  ;;  %237 = vmatpush.msra.mxu0 %v205_v3  ;;  %v199_v9 = vld [vmem:[%s668_s6 + $0x30] sm:$0xff]  ;;  %v200_v10 = vld [vmem:[%s668_s6 + $0x38] sm:$0xff]  ;;  %v197_v11 = vld [vmem:[%s668_s6 + $0x20] sm:$0xff]  ;;  %s293_s4 = sshll.u32 %s290_s26, 4  ;;  %s279_s16 = scalar_lea.sflag [#allocation4], %s664_s29  ;;  %s294_s4 = int_to_ptr.hbm [resolvable:$true] %s293_s4 }
  0x2d   : > { %388 = vmatpush.msra.mxu2 %v205_v3  ;;  %260 = vmatpush.msra.mxu1 %v206_v4  ;;  %v198_v12 = vld [vmem:[%s668_s6 + $0x28] sm:$0xff]  ;;  %v195_v13 = vld [vmem:[%s668_s6 + $0x10] sm:$0xff]  ;;  %v196_v14 = vld [vmem:[%s668_s6 + $0x18] sm:$0xff]  ;;  %s505_s8 = scalar_lea.hbm %s739_s3, 64 }
  0x2e   : > { %396 = vmatpush.msra.mxu3 %v206_v4  ;;  %238 = vmatpush.msra.mxu0 %v203_v5  ;;  %v193_v15 = vld [vmem:[%s668_s6] sm:$0xff]  ;;  %v194_v16 = vld [vmem:[%s668_s6 + $0x8] sm:$0xff]  ;;  %s499_s6 = sshra.s32 %s294_s4, 4  ;;  %s500_s6 = int_to_ptr.hbm [resolvable:$true] %s499_s6 }
  0x2f   : > { %389 = vmatpush.msra.mxu2 %v203_v5  ;;  %261 = vmatpush.msra.mxu1 %v204_v6  ;;  %v191_v17 = vld [vmem:[%s737_s1] sm:$0xff]  ;;  %v192_v18 = vld [vmem:[%s737_s1 + $0x8] sm:$0xff]  ;;  %s501_s23 = scalar_lea.hbm %s500_s6, 32  ;;  %p506_p0 = scmp.lt.s32.totalorder %s500_s6, %s739_s3 }
  0x30   : > { %397 = vmatpush.msra.mxu3 %v204_v6  ;;  %239 = vmatpush.msra.mxu0 %v201_v7  ;;  %v209_v19 = vld [vmem:[%s738_s2] sm:$0xff]  ;;  %v210_v20 = vld [vmem:[%s738_s2 + $0x8] sm:$0xff]  ;;  %p502_p6 = scmp.ne.s32.totalorder %s500_s6, %s501_s23  ;;  %p507_p1 = scmp.lt.s32.totalorder %s505_s8, %s501_s23 }
  0x31   : > { %390 = vmatpush.msra.mxu2 %v201_v7  ;;  %262 = vmatpush.msra.mxu1 %v202_v8 }
  0x32   : > { %398 = vmatpush.msra.mxu3 %v202_v8  ;;  %240 = vmatpush.msra.mxu0 %v199_v9  ;;  %p503_p9 = pnand %p502_p6, %p628_p11  ;;  %p508_p3 = por %p507_p1, %p506_p0 }
  0x33   : > { %391 = vmatpush.msra.mxu2 %v199_v9  ;;  %263 = vmatpush.msra.mxu1 %v200_v10 }
  0x34   : > { %399 = vmatpush.msra.mxu3 %v200_v10  ;;  %241 = vmatpush.msra.mxu0 %v197_v11  ;;  %p504_p13 = pneg %p503_p9 }
  0x35   : > { %392 = vmatpush.msra.mxu2 %v197_v11  ;;  %264 = vmatpush.msra.mxu1 %v198_v12 }
  0x36   : > { %400 = vmatpush.msra.mxu3 %v198_v12  ;;  %242 = vmatpush.msra.mxu0 %v195_v13  ;;  %p509_p4 = pnand %p508_p3, %p504_p13 }
  0x37   : > { %393 = vmatpush.msra.mxu2 %v195_v13  ;;  %265 = vmatpush.msra.mxu1 %v196_v14 }
  0x38   : > { %401 = vmatpush.msra.mxu3 %v196_v14  ;;  %243 = vmatpush.msra.mxu0 %v193_v15 }
  0x39   : > { %394 = vmatpush.msra.mxu2 %v193_v15  ;;  %266 = vmatpush.msra.mxu1 %v194_v16 }
  0x3a   : > { %402 = vmatpush.msra.mxu3 %v194_v16  ;;  %376 = vmatmul.msk.f32.vlgmr.msra.gmra.mxu0 %vm221_vm0, %v191_v17 }
  0x3b   : > { %377 = vmatmul.msk.f32.vlgmr.msra.gmra.mxu2 %vm221_vm0, %v192_v18  ;;  %378 = vmatmul.msk.f32.vlgmr.msra.gmra.mxu1 %vm221_vm0, %v191_v17 }
  0x3c   : > { %379 = vmatmul.msk.f32.vlgmr.msra.gmra.mxu3 %vm221_vm0, %v192_v18  ;;  %213 = vperm.xlu0 %454, %v209_v19  }
  0x44   : > { %218 = vperm.xlu0 %454, %v210_v20  }
  0xae   : > { %v214_v21 = vpop.permute.xlu0 %213 }
  0xb6   : > { %v219_v26 = vpop.permute.xlu0 %218 }
  0xb7   : > { %v245_v22 = vpop.f32.mrf.mxu0 }
  0xb8   : > { %v246_v23 = vadd.f32 %v245_v22, %v214_v21  ;;  %v268_v24 = vpop.f32.mrf.mxu1 }
  0xb9   : > { %v269_v25 = vadd.f32 %v268_v24, %v214_v21 }
  0xba   : > { %274 = vst [vmem:[%s190_s28] sm:$0xff] %v246_v23 }
  0xbb   : > { %275 = vst [vmem:[%s190_s28 + $0x8] sm:$0xff] %v269_v25 }
  0xbe   : > { %v248_v27 = vpop.f32.mrf.mxu2 }
  0xbf   : > { %v249_v28 = vadd.f32 %v248_v27, %v219_v26  ;;  %v271_v29 = vpop.f32.mrf.mxu3 }
  0xc0   : > { %v272_v30 = vadd.f32 %v271_v29, %v219_v26 }
  0xc1   : > { %276 = vst [vmem:[%s190_s28 + $0x10] sm:$0xff] %v249_v28 }
  0xc2   : > { %277 = vst [vmem:[%s190_s28 + $0x18] sm:$0xff] %v272_v30 }
  0xc3   : > { %512 = shalt.err (!%p509_p4)
}
  0xc4   : > { %s556_s29 = smov 256   ;;  %s557_s11 = smov 16  }
  0xc5   : > { %405 = dma.vmem_to_hbm [thread:$0]  (%p628_p11), %s292_s30, 512, %s294_s4, %s279_s16, %s556_s29, %s556_s29, %s557_s11  }
  0xc6 PF: > { %s308_s17 = sand.u32 1, %s539_s12   ;;  %p745_p7 = scmp.ge.s32.totalorder %s551_s15, 2 }
  0xc7   : > { %s309_s19 = scalar_lea.sflag [#allocation4], %s308_s17 }
  0xc8   : > { %p412_p5 = pnand %p745_p7, %p632_p12 }
  0xca   : > { %p413_p8 = pneg %p412_p5 }
  0xcc   : > { %534 = dma.done.wait (%p413_p8), %s309_s19, 512  }
  0xcd   : > { %536 = vsyncadd (%p413_p8), %s309_s19, 4294966784  ;;  %p16_p10 = scmp.ge.s32.totalorder %s603_s18, 4   ;;  %s746_s12 = smov %s543_s13 }
  0xce   : > { %s747_s13 = smov %s547_s14  ;;  %s748_s14 = smov %s615_s21 }
  0xcf   : > { %s749_s15 = smov %s603_s18  ;;  %18 = sbr.rel (!%p16_p10) target bundleno = 5 (0x5), region = 77 }
  0xd4   :  { %315 = vsyncpa [#allocation3], 1 }
  0xd5   :  { %317 = vsyncpa [#allocation3 + $0x1], 1 }
  0xd6   :  { %318 = vsyncpa [#allocation4], 1 }
  0xd7   :  { %320 = vsyncpa [#allocation4 + $0x1], 1 }

</bundles_post_ra>
